<compile_context>
chip_gen: v5e
topology: v5e:2x2
jax: 0.10.0
libtpu: 0.0.40
codegen_flags: <defaults>
</compile_context>

<pallas_src>
import functools

import jax
import jax.numpy as jnp
from jax.experimental import pallas as pl
from jax.experimental.pallas import tpu as pltpu


def mlp_kernel(x_ref, w_ref, b_ref, o_ref):
    # Single fused affine: (TR, F) @ (F, F) + (1, F), all resident in VMEM.
    o_ref[...] = (
        jnp.dot(x_ref[...], w_ref[...], preferred_element_type=jnp.float32)
        + b_ref[...]
    ).astype(o_ref.dtype)


def _round_up(n, m):
    return ((n + m - 1) // m) * m


def _cdiv(a, b):
    return -(-a // b)


def fold_and_pack_params(params):
    """Collapse the 3 affine layers and build the lane-dense packed weights.

    Returns {"W": (F, F), "b": (1, F)} where F = pack * ds and
    pack = 128 // ds when ds divides 128 (lane-dense block-diagonal form),
    otherwise pack = 1 (plain collapsed ds x ds weight).
    """
    w1, b1, w2, b2, w3, b3 = (
        params["w1"], params["b1"], params["w2"],
        params["b2"], params["w3"], params["b3"],
    )
    ds = w1.shape[0]
    # x@w1@w2@w3 + ((b1@w2 + b2)@w3 + b3)  — exact affine collapse (no acts).
    Wc = w1 @ w2 @ w3                              # (ds, ds)
    bc = (b1 @ w2 + b2) @ w3 + b3                  # (1, ds)

    if ds < 128 and 128 % ds == 0:
        pack = 128 // ds
        # Block-diagonal expansion: packed row [x_0 | x_1 | ... | x_{p-1}]
        # times kron(I_p, Wc) yields [x_0@Wc | x_1@Wc | ... ] — lane-dense.
        W = jnp.kron(jnp.eye(pack, dtype=Wc.dtype), Wc)   # (128, 128)
        b = jnp.tile(bc, (1, pack))                       # (1, 128)
    else:
        W, b = Wc, bc
    return {"W": W, "b": b}


@functools.partial(jax.jit, static_argnames=("batch_tile",))
def submodel1_forward(x, folded, *, batch_tile=2048):
    """x: (B, ds) float32. folded: output of fold_and_pack_params.

    Streams lane-dense (TR, F) batch tiles through VMEM with an auto-
    pipelined grid; the (F, F) weight and (1, F) bias use constant
    index_maps so they stay resident across all grid steps.
    `batch_tile` is the max packed-row tile (rows of the (R, F) view).
    """
    W, b = folded["W"], folded["b"]
    B, ds = x.shape
    F = W.shape[0]
    pack = F // ds                      # static at trace time

    # Guard: tile must be a multiple of 8 (sublane); cap for v7x 64 MiB VMEM.
    batch_tile = max(8, (min(int(batch_tile), 4096) // 8) * 8)

    # 1) Pad batch to a multiple of `pack`, view as lane-dense (R, F) rows.
    B1 = _round_up(B, pack)
    if B1 != B:
        x = jnp.pad(x, ((0, B1 - B), (0, 0)))
    R = B1 // pack
    xp = x.reshape(R, F)                # free row-major reshape

    # 2) Choose step count / tile so padding is < 1 tile and (when the batch
    #    is big enough) the grid has an even number of steps (v7x dual-TC).
    nsteps = _cdiv(R, batch_tile)
    if nsteps == 1 and R >= 16:
        nsteps = 2
    elif nsteps > 1 and nsteps % 2 == 1:
        nsteps += 1
    TR = min(batch_tile, _round_up(_cdiv(R, nsteps), 8))
    R_pad = _round_up(R, TR)
    if R_pad != R:
        xp = jnp.pad(xp, ((0, R_pad - R), (0, 0)))
    grid = (R_pad // TR,)

    out = pl.pallas_call(
        mlp_kernel,
        out_shape=jax.ShapeDtypeStruct((R_pad, F), x.dtype),
        grid=grid,
        in_specs=[
            pl.BlockSpec((TR, F), lambda i: (i, 0)),   # streamed x tiles
            pl.BlockSpec((F, F), lambda i: (0, 0)),    # resident weight
            pl.BlockSpec((1, F), lambda i: (0, 0)),    # resident bias
        ],
        out_specs=pl.BlockSpec((TR, F), lambda i: (i, 0)),
        compiler_params=pltpu.CompilerParams(
            # Batch tiles are independent -> shard across TCs on v7x.
            dimension_semantics=("parallel",),
            # Per-step footprint (double-buffered in+out at TR<=4096, F=128)
            # is <= ~8 MiB + 64 KiB of weights — well under this budget on
            # every generation (v7x scoped default is 32 MiB).
            vmem_limit_bytes=32 * 1024 * 1024,
        ),
    )(xp, W, b)

    # 3) Undo padding / packing (free reshape, cheap slices).
    out = out[:R].reshape(B1, ds)
    if B1 != B:
        out = out[:B]
    return out


def init_params(key, data_size, hidden_features):
    """Deterministic init mirroring nn.Linear shapes.

    PyTorch stores Linear weight as (out, in); we store the transpose
    (in, out) so the math is x @ W + b. Biases are (1, out).
    """
    ks = jax.random.split(key, 6)

    def linear(kw, kb, fan_in, fan_out):
        bound = 1.0 / jnp.sqrt(jnp.float32(fan_in))
        w = jax.random.uniform(kw, (fan_in, fan_out), jnp.float32, -bound, bound)
        b = jax.random.uniform(kb, (1, fan_out), jnp.float32, -bound, bound)
        return w, b

    w1, b1 = linear(ks[0], ks[1], data_size, hidden_features)
    w2, b2 = linear(ks[2], ks[3], hidden_features, hidden_features)
    w3, b3 = linear(ks[4], ks[5], hidden_features, data_size)
    return {"w1": w1, "b1": b1, "w2": w2, "b2": b2, "w3": w3, "b3": b3}


def reference_forward(x, p):
    # Un-collapsed 3-layer reference (matches the PyTorch module exactly).
    h = x @ p["w1"] + p["b1"]
    h = h @ p["w2"] + p["b2"]
    return h @ p["w3"] + p["b3"]


if __name__ == "__main__":
    key = jax.random.PRNGKey(0)
    k_x, k_p, k_x2 = jax.random.split(key, 3)

    batch = 8
    data_size = 32          # ds = kwargs['data_size']
    hidden_features = 64    # nf = kwargs['hidden_features']

    params = init_params(k_p, data_size, hidden_features)
    folded = fold_and_pack_params(params)   # affine collapse + lane-dense pack

    # Small shape: single grid step, exercises the tiny-B / packing-pad path.
    x = jax.random.normal(k_x, (batch, data_size), jnp.float32)
    out = jax.block_until_ready(submodel1_forward(x, folded))
    ref = reference_forward(x, params)
    assert out.shape == (batch, data_size)
    assert jnp.allclose(out, ref, atol=1e-4, rtol=1e-4)

    # Larger, non-tile-multiple batch: exercises the multi-step grid,
    # tail-friendly tiling, and result slicing.
    batch2 = 520
    x2 = jax.random.normal(k_x2, (batch2, data_size), jnp.float32)
    out2 = jax.block_until_ready(submodel1_forward(x2, folded, batch_tile=64))
    ref2 = reference_forward(x2, params)
    assert out2.shape == (batch2, data_size)
    assert jnp.allclose(out2, ref2, atol=1e-4, rtol=1e-4)

    print("KERNEL_OK")
</pallas_src>

<mosaic_0001>
module attributes {stable_mosaic.version = 11 : i64} {
  func.func @mlp_kernel(%arg0: i32, %arg1: memref<8x128xf32, #tpu.memory_space<vmem>>, %arg2: memref<128x128xf32, #tpu.memory_space<vmem>>, %arg3: memref<1x128xf32, #tpu.memory_space<vmem>>, %arg4: memref<8x128xf32, #tpu.memory_space<vmem>>) attributes {dimension_semantics = [#tpu.dimension_semantics<parallel>], iteration_bounds = array<i64: 1>, scalar_prefetch = 0 : i64, scratch_operands = 0 : i64, tpu.core_type = #tpu.core_type<tc>, window_params = [{transform_indices = @transform_0, window_bounds = array<i64: 8, 128>}, {pipeline_mode = #tpu.pipeline_mode<synchronous>, transform_indices = @transform_1, window_bounds = array<i64: 128, 128>}, {pipeline_mode = #tpu.pipeline_mode<synchronous>, transform_indices = @transform_2, window_bounds = array<i64: 1, 128>}, {transform_indices = @transform_3, window_bounds = array<i64: 8, 128>}]} {
    %c0 = arith.constant 0 : index
    %c0_0 = arith.constant 0 : index
    %0 = vector.load %arg1[%c0, %c0_0] : memref<8x128xf32, #tpu.memory_space<vmem>>, vector<8x128xf32>
    %c0_1 = arith.constant 0 : index
    %c0_2 = arith.constant 0 : index
    %1 = vector.load %arg2[%c0_1, %c0_2] : memref<128x128xf32, #tpu.memory_space<vmem>>, vector<128x128xf32>
    %cst = arith.constant dense<0.000000e+00> : vector<8x128xf32>
    %2 = tpu.matmul %0, %1, %cst {dimension_numbers = #tpu.dot_dimension_numbers<[1], [0], [0], [1], [0, 0, 1, 1], [], []>} : vector<8x128xf32>, vector<128x128xf32>, vector<8x128xf32> -> vector<8x128xf32>
    %c0_3 = arith.constant 0 : index
    %c0_4 = arith.constant 0 : index
    %3 = vector.load %arg3[%c0_3, %c0_4] : memref<1x128xf32, #tpu.memory_space<vmem>>, vector<1x128xf32>
    %4 = vector.broadcast %3 : vector<1x128xf32> to vector<8x128xf32>
    %5 = arith.addf %2, %4 : vector<8x128xf32>
    %c0_5 = arith.constant 0 : index
    %c0_6 = arith.constant 0 : index
    %6 = vector.load %arg4[%c0_5, %c0_6] : memref<8x128xf32, #tpu.memory_space<vmem>>, vector<8x128xf32>
    tpu.vector_store %arg4[%c0_5, %c0_6], %5 {strides = array<i32>} : memref<8x128xf32, #tpu.memory_space<vmem>>, vector<8x128xf32>,
    return
  }
  func.func @transform_0(%arg0: i32) -> (i32, i32) {
    %c0_i32 = arith.constant 0 : i32
    %c0_i32_0 = arith.constant 0 : i32
    return %arg0, %c0_i32 : i32, i32
  }
  func.func @transform_1(%arg0: i32) -> (i32, i32) {
    %c0_i32 = arith.constant 0 : i32
    %c0_i32_0 = arith.constant 0 : i32
    %c0_i32_1 = arith.constant 0 : i32
    return %c0_i32, %c0_i32_0 : i32, i32
  }
  func.func @transform_2(%arg0: i32) -> (i32, i32) {
    %c0_i32 = arith.constant 0 : i32
    %c0_i32_0 = arith.constant 0 : i32
    %c0_i32_1 = arith.constant 0 : i32
    return %c0_i32, %c0_i32_0 : i32, i32
  }
  func.func @transform_3(%arg0: i32) -> (i32, i32) {
    %c0_i32 = arith.constant 0 : i32
    %c0_i32_0 = arith.constant 0 : i32
    return %arg0, %c0_i32 : i32, i32
  }
}

</mosaic_0001>

<bundles_post_ra>
// kernel: submodel1_forward.1
= control target key start
LH: loop header
LB: loop body
LE: loop exit
PB: predicated region body
PF: predicated region fallthrough
CT: control target
= control target key end

     0   :  { %8 = vsyncpa [#allocation3], 0  ;;  %s107_s15 = smov [#allocation2]   ;;  %s108_s17 = smov 128   ;;  %s142_s0 = inlined_call_operand.vmem [shape: f32[8,128], index: 0, kind: input, shape index: {}]   ;;  %s143_s1 = inlined_call_operand.hbm [shape: f32[128,128], index: 1, kind: input, shape index: {}]   ;;  %s144_s2 = inlined_call_operand.vmem [shape: f32[1,128], index: 2, kind: input, shape index: {}]   ;;  %s145_s3 = inlined_call_operand.vmem [shape: f32[8,128], index: 3, kind: output, shape index: {}]  }
   0x1   :  { %s15_s14 = sshll.u32 %s143_s1, 4  ;;  %s17_s16 = sshll.u32 %s107_s15, 4  ;;  %s16_s14 = int_to_ptr.hbm [resolvable:$true] %s15_s14  ;;  %s18_s16 = int_to_ptr.vmem [resolvable:$true] %s17_s16 }
   0x2   :  { %s109_s18 = smov 8  }
   0x3   :  { %23 = dma.hbm_to_vmem [thread:$0]  %s16_s14, 2048, %s18_s16, [#allocation3], %s108_s17, %s108_s17, %s109_s18  }
   0x4   :  { %105 = dma.done.wait [#allocation3], 2048  }
   0x5   :  { %106 = vsyncadd [#allocation3], 4294965248  ;;  %v46_v0 = vld [vmem:[#allocation2 + $0x78] sm:$0xff]  ;;  %v45_v1 = vld [vmem:[#allocation2 + $0x70] sm:$0xff] }
   0x6   :  { %51 = vmatpush.msra.mxu0 %v46_v0  ;;  %v44_v2 = vld [vmem:[#allocation2 + $0x68] sm:$0xff]  ;;  %v43_v3 = vld [vmem:[#allocation2 + $0x60] sm:$0xff]  ;;  %v42_v4 = vld [vmem:[#allocation2 + $0x58] sm:$0xff] }
   0x7   :  { %v41_v5 = vld [vmem:[#allocation2 + $0x50] sm:$0xff]  ;;  %v40_v6 = vld [vmem:[#allocation2 + $0x48] sm:$0xff]  ;;  %v39_v7 = vld [vmem:[#allocation2 + $0x40] sm:$0xff] }
   0x8   :  { %52 = vmatpush.msra.mxu0 %v45_v1  ;;  %v38_v8 = vld [vmem:[#allocation2 + $0x38] sm:$0xff]  ;;  %v37_v9 = vld [vmem:[#allocation2 + $0x30] sm:$0xff]  ;;  %v36_v10 = vld [vmem:[#allocation2 + $0x28] sm:$0xff] }
   0x9   :  { %v35_v11 = vld [vmem:[#allocation2 + $0x20] sm:$0xff]  ;;  %v34_v12 = vld [vmem:[#allocation2 + $0x18] sm:$0xff]  ;;  %v33_v13 = vld [vmem:[#allocation2 + $0x10] sm:$0xff] }
   0xa   :  { %53 = vmatpush.msra.mxu0 %v44_v2  ;;  %v32_v14 = vld [vmem:[#allocation2 + $0x8] sm:$0xff]  ;;  %v31_v15 = vld [vmem:[#allocation2] sm:$0xff] }
   0xb   :  { %v30_v16 = vld [vmem:[%s142_s0] sm:$0xff] }
   0xc   :  { %54 = vmatpush.msra.mxu0 %v43_v3  ;;  %v80_v17 = vld [vmem:[%s144_s2] ss:$0 sm:$0xff] }
   0xe   :  { %55 = vmatpush.msra.mxu0 %v42_v4 }
  0x10   :  { %56 = vmatpush.msra.mxu0 %v41_v5 }
  0x12   :  { %57 = vmatpush.msra.mxu0 %v40_v6 }
  0x14   :  { %58 = vmatpush.msra.mxu0 %v39_v7 }
  0x16   :  { %59 = vmatpush.msra.mxu0 %v38_v8 }
  0x18   :  { %60 = vmatpush.msra.mxu0 %v37_v9 }
  0x1a   :  { %61 = vmatpush.msra.mxu0 %v36_v10 }
  0x1c   :  { %62 = vmatpush.msra.mxu0 %v35_v11 }
  0x1e   :  { %63 = vmatpush.msra.mxu0 %v34_v12 }
  0x20   :  { %64 = vmatpush.msra.mxu0 %v33_v13 }
  0x22   :  { %65 = vmatpush.msra.mxu0 %v32_v14 }
  0x24   :  { %66 = vmatpush.msra.mxu0 %v31_v15 }
  0x25   :  { %67 = vmatmul.f32.vlgmr.msra.gmra.mxu0 %v30_v16 }
  0xa2   :  { %v68_v18 = vpop.f32.mrf.mxu0 }
  0xa3   :  { %v69_v19 = vadd.f32 %v80_v17, %v68_v18 }
  0xa5   :  { %71 = vst [vmem:[%s145_s3] sm:$0xff] %v69_v19 }
  0xa6   :  { %76 = vsyncpa [#allocation3], 1 }

</bundles_post_ra>
